<compile_context>
chip_gen: v7x
topology: tpu7x:2x2x1
jax: 0.10.0
libtpu: 0.0.40
codegen_flags: <defaults>
</compile_context>

<pallas_src>
import functools
import math

import jax
import jax.numpy as jnp
from jax.experimental import pallas as pl
from jax.experimental.pallas import tpu as pltpu


# ---------------- fused direct 3-D convolution kernel ----------------

def _conv3d_kernel(x_ref, w_ref, b_ref, o_ref, acc_ref, *, n_kh, n_kw, act):
    kd = pl.program_id(2)
    cin = w_ref.shape[2]
    cout = w_ref.shape[3]
    squeeze = len(o_ref.shape) == 3           # Cout==1 outputs drop the channel dim
    ho = o_ref.shape[1]
    wo = o_ref.shape[2]
    use_mxu = (cin > 1) and (cout > 1)

    @pl.when(kd == 0)
    def _():
        acc_ref[...] = jnp.zeros_like(acc_ref)

    xs_full = x_ref[0]                        # (Hp, Wp, Cin), one padded depth slice
    for kh in range(n_kh):
        for kw in range(n_kw):
            xs = xs_full[kh:kh + ho, kw:kw + wo, :]
            wt = w_ref[0, kh * n_kw + kw]     # (Cin, Cout)
            if use_mxu:
                acc_ref[...] += jax.lax.dot_general(
                    xs.reshape(ho * wo, cin), wt,
                    dimension_numbers=(((1,), (0,)), ((), ())),
                    preferred_element_type=jnp.float32)
            elif cin == 1:
                # VPU broadcast path (1 -> Cout): avoids K=1 MXU matmuls.
                acc_ref[...] += xs.astype(jnp.float32) * wt.astype(jnp.float32)
            else:
                # VPU reduce path (Cin -> 1): avoids N=1 MXU matmuls.
                acc_ref[...] += jnp.sum(
                    xs.astype(jnp.float32) * wt[:, 0].astype(jnp.float32),
                    axis=-1, keepdims=True)

    @pl.when(kd == pl.num_programs(2) - 1)
    def _():
        if use_mxu:
            res = acc_ref[...] + b_ref[0]                 # (Ho*Wo, Cout)
            if act == "relu":
                res = jnp.maximum(res, 0.0)
            o_ref[0] = res.reshape(ho, wo, cout)
        else:
            res = acc_ref[...] + b_ref[...]               # (Ho, Wo, Cout)
            if act == "relu":
                res = jnp.maximum(res, 0.0)
            o_ref[0] = res[:, :, 0] if squeeze else res


@functools.partial(jax.jit, static_argnames=("act",))
def _conv3d_core(xp, wk, b, act="none"):
    """Valid 3-D conv on an already-padded NDHWC input.

    xp: (B, Dp, Hp, Wp, Cin); wk: (kD, kH, kW, Cin, Cout); b: (Cout,).
    Returns (B, Do, Ho, Wo, Cout) float32.
    """
    B, Dp, Hp, Wp, Cin = xp.shape
    kD, kH, kW, _, Cout = wk.shape
    Do, Ho, Wo = Dp - kD + 1, Hp - kH + 1, Wp - kW + 1
    use_mxu = (Cin > 1) and (Cout > 1)
    cdt = jnp.bfloat16 if use_mxu else jnp.float32

    x4 = xp.astype(cdt).reshape(B * Dp, Hp, Wp, Cin)
    w4 = wk.astype(cdt).reshape(kD, kH * kW, Cin, Cout)
    bias = b.reshape(1, 1, Cout).astype(jnp.float32)
    acc_shape = (Ho * Wo, Cout) if use_mxu else (Ho, Wo, Cout)

    if Cout == 1:
        out_struct = jax.ShapeDtypeStruct((B * Do, Ho, Wo), jnp.float32)
        out_spec = pl.BlockSpec((1, Ho, Wo), lambda bb, d, kd: (bb * Do + d, 0, 0))
    else:
        out_struct = jax.ShapeDtypeStruct((B * Do, Ho, Wo, Cout), jnp.float32)
        out_spec = pl.BlockSpec((1, Ho, Wo, Cout),
                                lambda bb, d, kd: (bb * Do + d, 0, 0, 0))

    out = pl.pallas_call(
        functools.partial(_conv3d_kernel, n_kh=kH, n_kw=kW, act=act),
        out_shape=out_struct,
        grid=(B, Do, kD),
        in_specs=[
            pl.BlockSpec((1, Hp, Wp, Cin),
                         lambda bb, d, kd: (bb * Dp + d + kd, 0, 0, 0)),
            pl.BlockSpec((1, kH * kW, Cin, Cout), lambda bb, d, kd: (kd, 0, 0, 0)),
            pl.BlockSpec((1, 1, Cout), lambda bb, d, kd: (0, 0, 0)),
        ],
        out_specs=out_spec,
        scratch_shapes=[pltpu.VMEM(acc_shape, jnp.float32)],
        compiler_params=pltpu.CompilerParams(
            dimension_semantics=("parallel", "parallel", "arbitrary")),
    )(x4, w4, bias)

    if Cout == 1:
        return out.reshape(B, Do, Ho, Wo, 1)
    return out.reshape(B, Do, Ho, Wo, Cout)


def conv3d(x, w, b, padding=1, act="none"):
    """x: (B,D,H,W,Cin); w: PyTorch Conv3d layout (Cout,Cin,kD,kH,kW); stride 1."""
    Cout, Cin, kD, kH, kW = w.shape
    if isinstance(padding, int):
        padding = (padding, padding, padding)
    pd, ph, pw = padding
    xp = jnp.pad(x, ((0, 0), (pd, pd), (ph, ph), (pw, pw), (0, 0)))
    wk = jnp.transpose(w, (2, 3, 4, 1, 0))          # (kD,kH,kW,Cin,Cout)
    return _conv3d_core(xp, wk, b, act=act)


# ---------------- tiled matmul (+bias, +activation) for 1x1x1 convs ----------------

def _matmul_bias_act_kernel(a_ref, b_ref, bias_ref, o_ref, *, act):
    acc = jnp.dot(a_ref[...], b_ref[...], preferred_element_type=jnp.float32)
    acc = acc + bias_ref[...]
    if act == "relu":
        acc = jnp.maximum(acc, 0.0)
    o_ref[...] = acc


@functools.partial(jax.jit, static_argnames=("act",))
def matmul_bias_act(a, b, bias, act="none"):
    """(M,K) @ (K,N) + bias, bf16 MXU operands, grid-tiled over M."""
    M, K = a.shape
    N = b.shape[1]
    tm = M if M <= 512 else 512
    grid_m = pl.cdiv(M, tm)
    return pl.pallas_call(
        functools.partial(_matmul_bias_act_kernel, act=act),
        out_shape=jax.ShapeDtypeStruct((M, N), jnp.float32),
        grid=(grid_m,),
        in_specs=[pl.BlockSpec((tm, K), lambda i: (i, 0)),
                  pl.BlockSpec((K, N), lambda i: (0, 0)),
                  pl.BlockSpec((1, N), lambda i: (0, 0))],
        out_specs=pl.BlockSpec((tm, N), lambda i: (i, 0)),
        compiler_params=pltpu.CompilerParams(dimension_semantics=("parallel",)),
    )(a.astype(jnp.bfloat16), b.astype(jnp.bfloat16),
      bias.reshape(1, N).astype(jnp.float32))


def conv1x1(x, w, b, act="none"):
    """1x1x1 Conv3d == channel matmul. w: (Cout,Cin,1,1,1)."""
    B, D, H, W, Cin = x.shape
    Cout = w.shape[0]
    a = x.reshape(B * D * H * W, Cin)
    wm = w.reshape(Cout, Cin).T
    out = matmul_bias_act(a, wm, b, act=act)
    return out.reshape(B, D, H, W, Cout)


# ---------------- transposed conv: sub-pixel phase decomposition ----------------

def _transpose_phase(s, r, k, p):
    """Taps contributing to output phase r (mod s) of a 1-D transposed conv."""
    js = [j for j in range(-k, k + 1) if 0 <= j * s + r + p < k]
    j_max = max(js)
    n = len(js)
    ks = [(j_max - t) * s + r + p for t in range(n)]   # ordered by ascending input idx
    start = p - j_max                                  # offset into the pre-padded input
    return ks, start, n


def conv_transpose3d(x, w, b, stride, padding):
    """ConvTranspose3d, w: PyTorch layout (Cin,Cout,kD,kH,kW).
    Decomposed into stride^2 small valid convolutions + pixel shuffle."""
    B, D, H, W, Cin = x.shape
    _, Cout, kD, kH, kW = w.shape
    sd, sh, sw = stride
    pd, ph, pw = padding
    out_D = (D - 1) * sd - 2 * pd + kD
    out_H = (H - 1) * sh - 2 * ph + kH
    out_W = (W - 1) * sw - 2 * pw + kW
    assert out_D == D * sd and out_H == H * sh and out_W == W * sw

    wt = jnp.transpose(w, (2, 3, 4, 0, 1))             # (kD,kH,kW,Cin,Cout)
    xp = jnp.pad(x, ((0, 0), (pd, pd), (ph, ph), (pw, pw), (0, 0)))

    outs = []
    for rd in range(sd):
        d_ks, d_s, d_n = _transpose_phase(sd, rd, kD, pd)
        for rh in range(sh):
            h_ks, h_s, h_n = _transpose_phase(sh, rh, kH, ph)
            for rw in range(sw):
                w_ks, w_s, w_n = _transpose_phase(sw, rw, kW, pw)
                wk = wt[jnp.array(d_ks)[:, None, None],
                        jnp.array(h_ks)[None, :, None],
                        jnp.array(w_ks)[None, None, :]]     # (d_n,h_n,w_n,Cin,Cout)
                xs = xp[:, d_s:d_s + D + d_n - 1,
                        h_s:h_s + H + h_n - 1,
                        w_s:w_s + W + w_n - 1, :]
                outs.append(_conv3d_core(xs, wk, b, act="none"))
    stacked = jnp.stack(outs, axis=0).reshape(sd, sh, sw, B, D, H, W, Cout)
    out = jnp.transpose(stacked, (3, 4, 0, 5, 1, 6, 2, 7))
    return out.reshape(B, D * sd, H * sh, W * sw, Cout)


# ---------------- fused covariance + Newton-Schulz matrix sqrt ----------------

def _cov_sqrtm_kernel(x_ref, o_ref, gram_ref, sum_ref, *, m_true, iter_n):
    k = pl.program_id(1)

    @pl.when(k == 0)
    def _():
        gram_ref[...] = jnp.zeros_like(gram_ref)
        sum_ref[...] = jnp.zeros_like(sum_ref)

    xb = x_ref[0]                                       # (TK, C) float32
    gram_ref[...] += jax.lax.dot_general(
        xb, xb, dimension_numbers=(((0,), (0,)), ((), ())),
        preferred_element_type=jnp.float32)
    sum_ref[...] += jnp.sum(xb, axis=0, keepdims=True)

    @pl.when(k == pl.num_programs(1) - 1)
    def _():
        C = gram_ref.shape[0]
        inv_m = 1.0 / m_true
        s = sum_ref[...]                                # (1, C)
        # c = aa @ xT of the reference is exactly the outer product of channel sums.
        cov = inv_m * gram_ref[...] - (inv_m * inv_m) * (jnp.transpose(s) * s)

        row = jax.lax.broadcasted_iota(jnp.int32, (C, C), 0)
        col = jax.lax.broadcasted_iota(jnp.int32, (C, C), 1)
        eye = (row == col).astype(jnp.float32)
        i3 = 3.0 * eye
        tr = jnp.sum(cov * eye)                         # trace normalization
        a = cov / tr
        zy = 0.5 * (i3 - a)
        y = jnp.dot(a, zy, preferred_element_type=jnp.float32)
        z = zy
        for _ in range(1, iter_n - 1):
            zy = 0.5 * (i3 - jnp.dot(z, y, preferred_element_type=jnp.float32))
            y, z = (jnp.dot(y, zy, preferred_element_type=jnp.float32),
                    jnp.dot(zy, z, preferred_element_type=jnp.float32))
        yzy = 0.5 * jnp.dot(y, i3 - jnp.dot(z, y, preferred_element_type=jnp.float32),
                            preferred_element_type=jnp.float32)
        o_ref[0] = yzy * jnp.sqrt(tr)


@functools.partial(jax.jit, static_argnames=("iter_n",))
def cov_sqrtm(x_bmc, iter_n=5):
    """x: (B, M, C) -> Newton-Schulz sqrt of the channel covariance, (B, C, C)."""
    # TODO(synk): MPNCOV.SqrtmLayer is not defined in the source file; this is the
    # standard iSQRT-COV Newton-Schulz forward (trace-normalize, iterate, rescale).
    B, M, C = x_bmc.shape
    tk = M if M <= 1024 else 1024
    tk = ((tk + 7) // 8) * 8
    mp = ((M + tk - 1) // tk) * tk
    x = x_bmc.astype(jnp.float32)
    if mp != M:
        x = jnp.pad(x, ((0, 0), (0, mp - M), (0, 0)))   # zero rows are exact here
    return pl.pallas_call(
        functools.partial(_cov_sqrtm_kernel, m_true=float(M), iter_n=iter_n),
        out_shape=jax.ShapeDtypeStruct((B, C, C), jnp.float32),
        grid=(B, mp // tk),
        in_specs=[pl.BlockSpec((1, tk, C), lambda b, k: (b, k, 0))],
        out_specs=pl.BlockSpec((1, C, C), lambda b, k: (b, 0, 0)),
        scratch_shapes=[pltpu.VMEM((C, C), jnp.float32),
                        pltpu.VMEM((1, C), jnp.float32)],
        compiler_params=pltpu.CompilerParams(
            dimension_semantics=("parallel", "arbitrary")),
    )(x)


# ---------------- fused 2-way softmax + weighted combine ----------------

def _softmax_combine_kernel(a_ref, b_ref, x_ref, y_ref, o_ref):
    a = a_ref[...]
    b = b_ref[...]
    m = jnp.maximum(a, b)
    ea = jnp.exp(a - m)
    eb = jnp.exp(b - m)
    o_ref[...] = (ea * x_ref[...] + eb * y_ref[...]) * pl.reciprocal(ea + eb,
                                                                     approx=True)


@jax.jit
def softmax_combine(a, b, x, y):
    """softmax over the 2 "channels" (a,b) and weighted sum of (x,y), fused."""
    shape = a.shape
    n = a.size
    rows = pl.cdiv(n, 128)
    npad = rows * 128 - n

    def prep(t):
        t = t.reshape(-1).astype(jnp.float32)
        if npad:
            t = jnp.pad(t, (0, npad))
        return t.reshape(rows, 128)

    a2, b2, x2, y2 = prep(a), prep(b), prep(x), prep(y)
    tr = rows if rows <= 2048 else 2048
    spec = pl.BlockSpec((tr, 128), lambda i: (i, 0))
    out = pl.pallas_call(
        _softmax_combine_kernel,
        out_shape=jax.ShapeDtypeStruct((rows, 128), jnp.float32),
        grid=(pl.cdiv(rows, tr),),
        in_specs=[spec, spec, spec, spec],
        out_specs=spec,
        compiler_params=pltpu.CompilerParams(dimension_semantics=("parallel",)),
    )(a2, b2, x2, y2)
    out = out.reshape(-1)
    if npad:
        out = out[:n]
    return out.reshape(shape)


# ---------------- se3D (second-order attention) ----------------

def se3d_forward(p, x):
    B, D, H, W, C = x.shape
    # branch 1: global average pool + two 1x1x1 convs (tiny (B,64) matmuls -> XLA).
    x1 = jnp.mean(x, axis=(1, 2, 3))
    x1 = x1 @ p["conv1_w"].reshape(C, C).T + p["conv1_b"]
    x1 = x1 @ p["conv12_w"].reshape(C, C).T + p["conv12_b"]
    # branch 2: fused covariance + Newton-Schulz sqrt (Pallas), row-mean, two convs.
    cov_sqrt = cov_sqrtm(x.reshape(B, D * H * W, C))
    x2 = jnp.mean(cov_sqrt, axis=1)
    x2 = x2 @ p["conv2_w"].reshape(C, C).T + p["conv2_b"]
    x2 = x2 @ p["conv22_w"].reshape(C, C).T + p["conv22_b"]
    cat = jnp.concatenate([x1, x2], axis=-1)
    gate = jax.nn.sigmoid(cat @ p["conv3_w"].reshape(C, 2 * C).T + p["conv3_b"])
    return x * gate[:, None, None, None, :]


# ---------------- Res2net block / residual networks ----------------

def res2net_forward(p, x):
    residual = x
    out = conv1x1(x, p["input_w"], p["input_b"], act="relu")
    o1, o2, o3, o4 = (out[..., 0:16], out[..., 16:32],
                      out[..., 32:48], out[..., 48:64])
    o22 = conv3d(o2, p["conv1_w"], p["conv1_b"], padding=1, act="relu")
    o33 = conv3d(o3 + o22, p["conv2_w"], p["conv2_b"], padding=1, act="relu")
    o44 = conv3d(o4 + o33, p["conv3_w"], p["conv3_b"], padding=1, act="relu")
    out = jnp.concatenate([o1, o22, o33, o44], axis=-1)
    out = conv1x1(out, p["output_w"], p["output_b"])
    out = residual + out
    return se3d_forward(p["senet"], out)


def single_network_forward(blocks, x):
    residual = x
    out = x
    for p in blocks:
        out = res2net_forward(p, out)
        out = out + residual
    return out


# ---------------- SRCNN forward ----------------

def srcnn_forward(P, x_ncdhw, scale):
    x = jnp.transpose(x_ncdhw, (0, 2, 3, 4, 1)).astype(jnp.float32)   # NCDHW -> NDHWC

    # branch A
    out = conv3d(x, P["input1_w"], P["input1_b"], padding=1, act="relu")
    out = single_network_forward(P["rl1"], out)
    out = conv_transpose3d(out, P["tail1_ct_w"], P["tail1_ct_b"],
                           (1, scale, scale), (1, 1, 1))
    out = conv3d(out, P["tail1_c_w"], P["tail1_c_b"])
    out00 = conv3d(out, P["output2_w"], P["output2_b"])
    a1 = conv3d(out00, P["qz1_w"], P["qz1_b"])
    a2 = conv3d(a1, P["qz2_w"], P["qz2_b"])

    # branch B
    out1 = conv3d(x, P["input2_w"], P["input2_b"], padding=1, act="relu")
    out1 = single_network_forward(P["rl2"], out1)
    out1 = conv_transpose3d(out1, P["tail2_ct_w"], P["tail2_ct_b"],
                            (1, scale, scale), (1, 1, 1))
    out1 = conv3d(out1, P["tail2_c_w"], P["tail2_c_b"])
    out1 = conv3d(out1, P["output21_w"], P["output21_b"])
    b1 = conv3d(out1, P["qz3_w"], P["qz3_b"])
    b2 = conv3d(b1, P["qz4_w"], P["qz4_b"])

    # softmax over the 2-channel concat + weighted sum (fused Pallas kernel)
    out3 = softmax_combine(a2, b2, out00, out1)                        # (B,D,Ho,Wo,1)
    return jnp.transpose(out3, (0, 4, 1, 2, 3))                        # back to NCDHW


# ---------------- deterministic parameter init (synthetic) ----------------

class _KeyGen:
    def __init__(self, key):
        self._key = key
        self._i = 0

    def __call__(self):
        self._i += 1
        return jax.random.fold_in(self._key, self._i)


def _conv_init(key, cout, cin, kd, kh, kw):
    fan_in = cin * kd * kh * kw
    w = jax.random.normal(key, (cout, cin, kd, kh, kw), jnp.float32) / math.sqrt(fan_in)
    return w, jnp.zeros((cout,), jnp.float32)


def _convT_init(key, cin, cout, kd, kh, kw):
    # weight_norm(v) at PyTorch init is identity (g = ||v||), so plain weights suffice.
    fan = cin * kd * kh * kw
    w = jax.random.normal(key, (cin, cout, kd, kh, kw), jnp.float32) / math.sqrt(fan)
    return w, jnp.zeros((cout,), jnp.float32)


def _init_res2net(kg):
    p = {}
    p["input_w"], p["input_b"] = _conv_init(kg(), 64, 64, 1, 1, 1)
    p["output_w"], p["output_b"] = _conv_init(kg(), 64, 64, 1, 1, 1)
    p["conv1_w"], p["conv1_b"] = _conv_init(kg(), 16, 16, 3, 3, 3)
    p["conv2_w"], p["conv2_b"] = _conv_init(kg(), 16, 16, 3, 3, 3)
    p["conv3_w"], p["conv3_b"] = _conv_init(kg(), 16, 16, 3, 3, 3)
    s = {}
    s["conv1_w"], s["conv1_b"] = _conv_init(kg(), 64, 64, 1, 1, 1)
    s["conv12_w"], s["conv12_b"] = _conv_init(kg(), 64, 64, 1, 1, 1)
    s["conv2_w"], s["conv2_b"] = _conv_init(kg(), 64, 64, 1, 1, 1)
    s["conv22_w"], s["conv22_b"] = _conv_init(kg(), 64, 64, 1, 1, 1)
    s["conv3_w"], s["conv3_b"] = _conv_init(kg(), 64, 128, 1, 1, 1)
    p["senet"] = s
    return p


def init_params(key, scale):
    kg = _KeyGen(key)
    k = 2 + scale
    P = {}
    P["input1_w"], P["input1_b"] = _conv_init(kg(), 64, 1, 3, 3, 3)
    P["input2_w"], P["input2_b"] = _conv_init(kg(), 64, 1, 3, 3, 3)
    P["rl1"] = [_init_res2net(kg) for _ in range(11)]
    P["rl2"] = [_init_res2net(kg) for _ in range(11)]
    P["tail1_ct_w"], P["tail1_ct_b"] = _convT_init(kg(), 64, 64, 3, k, k)
    P["tail1_c_w"], P["tail1_c_b"] = _conv_init(kg(), 16, 64, 3, 3, 3)
    P["tail2_ct_w"], P["tail2_ct_b"] = _convT_init(kg(), 64, 64, 3, k, k)
    P["tail2_c_w"], P["tail2_c_b"] = _conv_init(kg(), 16, 64, 3, 3, 3)
    P["output2_w"], P["output2_b"] = _conv_init(kg(), 1, 16, 3, 3, 3)
    P["output21_w"], P["output21_b"] = _conv_init(kg(), 1, 16, 3, 3, 3)
    P["qz1_w"], P["qz1_b"] = _conv_init(kg(), 1, 1, 3, 3, 3)
    P["qz2_w"], P["qz2_b"] = _conv_init(kg(), 1, 1, 3, 3, 3)
    P["qz3_w"], P["qz3_b"] = _conv_init(kg(), 1, 1, 3, 3, 3)
    P["qz4_w"], P["qz4_b"] = _conv_init(kg(), 1, 1, 3, 3, 3)
    return P


if __name__ == "__main__":
    scale = 2
    B, D, H, W = 2, 4, 4, 4
    x = jax.random.normal(jax.random.PRNGKey(0), (B, 1, D, H, W), jnp.float32)
    params = init_params(jax.random.PRNGKey(1), scale)

    out = srcnn_forward(params, x, scale)
    out = jax.block_until_ready(out)

    assert out.shape == (B, 1, D, H * scale, W * scale), out.shape
    assert bool(jnp.all(jnp.isfinite(out)))
    print("KERNEL_OK")
</pallas_src>

<mosaic_0001>
module attributes {stable_mosaic.version = 11 : i64} {
  func.func @_conv3d_kernel(%arg0: i32, %arg1: i32, %arg2: i32, %arg3: memref<1x6x6x1xf32, #tpu.memory_space<vmem>>, %arg4: memref<1x9x1x64xf32, #tpu.memory_space<vmem>>, %arg5: memref<1x1x64xf32, #tpu.memory_space<vmem>>, %arg6: memref<1x4x4x64xf32, #tpu.memory_space<vmem>>, %arg7: memref<4x4x64xf32, #tpu.memory_space<vmem>>) attributes {dimension_semantics = [#tpu.dimension_semantics<parallel>, #tpu.dimension_semantics<parallel>, #tpu.dimension_semantics<arbitrary>], iteration_bounds = array<i64: 2, 4, 3>, scalar_prefetch = 0 : i64, scratch_operands = 1 : i64, tpu.core_type = #tpu.core_type<tc>, window_params = [{transform_indices = @transform_0, window_bounds = array<i64: 1, 6, 6, 1>}, {transform_indices = @transform_1, window_bounds = array<i64: 1, 9, 1, 64>}, {pipeline_mode = #tpu.pipeline_mode<synchronous>, transform_indices = @transform_2, window_bounds = array<i64: 1, 1, 64>}, {transform_indices = @transform_3, window_bounds = array<i64: 1, 4, 4, 64>}]} {
    %c0_i32 = arith.constant 0 : i32
    %0 = arith.cmpi eq, %arg2, %c0_i32 : i32
    %1 = arith.extui %0 : i1 to i32
    %c0_i32_0 = arith.constant 0 : i32
    %2 = arith.cmpi ne, %1, %c0_i32_0 : i32
    scf.if %2 {
      %cst = arith.constant 0.000000e+00 : f32
      %98 = vector.broadcast %cst : f32 to vector<4x4x64xf32>
      %c0_87 = arith.constant 0 : index
      %c0_88 = arith.constant 0 : index
      %c0_89 = arith.constant 0 : index
      %99 = vector.load %arg7[%c0_87, %c0_88, %c0_89] : memref<4x4x64xf32, #tpu.memory_space<vmem>>, vector<4x4x64xf32>
      tpu.vector_store %arg7[%c0_87, %c0_88, %c0_89], %98 {strides = array<i32>} : memref<4x4x64xf32, #tpu.memory_space<vmem>>, vector<4x4x64xf32>,
    } else {
    }
    %c0 = arith.constant 0 : index
    %c0_1 = arith.constant 0 : index
    %c0_2 = arith.constant 0 : index
    %c0_3 = arith.constant 0 : index
    %3 = vector.load %arg3[%c0, %c0_1, %c0_2, %c0_3] : memref<1x6x6x1xf32, #tpu.memory_space<vmem>>, vector<1x6x6x1xf32>
    %4 = vector.shape_cast %3 : vector<1x6x6x1xf32> to vector<6x6x1xf32>
    %5 = vector.extract_strided_slice %4 {offsets = [0, 0, 0], sizes = [4, 4, 1], strides = [1, 1, 1]} : vector<6x6x1xf32> to vector<4x4x1xf32>
    %c0_4 = arith.constant 0 : index
    %c0_5 = arith.constant 0 : index
    %c0_6 = arith.constant 0 : index
    %c0_7 = arith.constant 0 : index
    %6 = vector.load %arg4[%c0_4, %c0_5, %c0_6, %c0_7] : memref<1x9x1x64xf32, #tpu.memory_space<vmem>>, vector<1x1x1x64xf32>
    %7 = vector.shape_cast %6 : vector<1x1x1x64xf32> to vector<1x64xf32>
    %c0_8 = arith.constant 0 : index
    %c0_9 = arith.constant 0 : index
    %c0_10 = arith.constant 0 : index
    %8 = vector.load %arg7[%c0_8, %c0_9, %c0_10] : memref<4x4x64xf32, #tpu.memory_space<vmem>>, vector<4x4x64xf32>
    %9 = vector.shape_cast %7 : vector<1x64xf32> to vector<1x1x64xf32>
    %10 = vector.broadcast %5 : vector<4x4x1xf32> to vector<4x4x64xf32>
    %11 = vector.broadcast %9 : vector<1x1x64xf32> to vector<4x4x64xf32>
    %12 = arith.mulf %10, %11 : vector<4x4x64xf32>
    %13 = arith.addf %8, %12 : vector<4x4x64xf32>
    %c0_11 = arith.constant 0 : index
    %c0_12 = arith.constant 0 : index
    %c0_13 = arith.constant 0 : index
    %14 = vector.load %arg7[%c0_11, %c0_12, %c0_13] : memref<4x4x64xf32, #tpu.memory_space<vmem>>, vector<4x4x64xf32>
    tpu.vector_store %arg7[%c0_11, %c0_12, %c0_13], %13 {strides = array<i32>} : memref<4x4x64xf32, #tpu.memory_space<vmem>>, vector<4x4x64xf32>,
    %15 = vector.extract_strided_slice %4 {offsets = [0, 1, 0], sizes = [4, 4, 1], strides = [1, 1, 1]} : vector<6x6x1xf32> to vector<4x4x1xf32>
    %c0_14 = arith.constant 0 : index
    %c1 = arith.constant 1 : index
    %c0_15 = arith.constant 0 : index
    %c0_16 = arith.constant 0 : index
    %16 = vector.load %arg4[%c0_14, %c1, %c0_15, %c0_16] : memref<1x9x1x64xf32, #tpu.memory_space<vmem>>, vector<1x1x1x64xf32>
    %17 = vector.shape_cast %16 : vector<1x1x1x64xf32> to vector<1x64xf32>
    %c0_17 = arith.constant 0 : index
    %c0_18 = arith.constant 0 : index
    %c0_19 = arith.constant 0 : index
    %18 = vector.load %arg7[%c0_17, %c0_18, %c0_19] : memref<4x4x64xf32, #tpu.memory_space<vmem>>, vector<4x4x64xf32>
    %19 = vector.shape_cast %17 : vector<1x64xf32> to vector<1x1x64xf32>
    %20 = vector.broadcast %15 : vector<4x4x1xf32> to vector<4x4x64xf32>
    %21 = vector.broadcast %19 : vector<1x1x64xf32> to vector<4x4x64xf32>
    %22 = arith.mulf %20, %21 : vector<4x4x64xf32>
    %23 = arith.addf %18, %22 : vector<4x4x64xf32>
    %c0_20 = arith.constant 0 : index
    %c0_21 = arith.constant 0 : index
    %c0_22 = arith.constant 0 : index
    %24 = vector.load %arg7[%c0_20, %c0_21, %c0_22] : memref<4x4x64xf32, #tpu.memory_space<vmem>>, vector<4x4x64xf32>
    tpu.vector_store %arg7[%c0_20, %c0_21, %c0_22], %23 {strides = array<i32>} : memref<4x4x64xf32, #tpu.memory_space<vmem>>, vector<4x4x64xf32>,
    %25 = vector.extract_strided_slice %4 {offsets = [0, 2, 0], sizes = [4, 4, 1], strides = [1, 1, 1]} : vector<6x6x1xf32> to vector<4x4x1xf32>
    %c0_23 = arith.constant 0 : index
    %c2 = arith.constant 2 : index
    %c0_24 = arith.constant 0 : index
    %c0_25 = arith.constant 0 : index
    %26 = vector.load %arg4[%c0_23, %c2, %c0_24, %c0_25] : memref<1x9x1x64xf32, #tpu.memory_space<vmem>>, vector<1x1x1x64xf32>
    %27 = vector.shape_cast %26 : vector<1x1x1x64xf32> to vector<1x64xf32>
    %c0_26 = arith.constant 0 : index
    %c0_27 = arith.constant 0 : index
    %c0_28 = arith.constant 0 : index
    %28 = vector.load %arg7[%c0_26, %c0_27, %c0_28] : memref<4x4x64xf32, #tpu.memory_space<vmem>>, vector<4x4x64xf32>
    %29 = vector.shape_cast %27 : vector<1x64xf32> to vector<1x1x64xf32>
    %30 = vector.broadcast %25 : vector<4x4x1xf32> to vector<4x4x64xf32>
    %31 = vector.broadcast %29 : vector<1x1x64xf32> to vector<4x4x64xf32>
    %32 = arith.mulf %30, %31 : vector<4x4x64xf32>
    %33 = arith.addf %28, %32 : vector<4x4x64xf32>
    %c0_29 = arith.constant 0 : index
    %c0_30 = arith.constant 0 : index
    %c0_31 = arith.constant 0 : index
    %34 = vector.load %arg7[%c0_29, %c0_30, %c0_31] : memref<4x4x64xf32, #tpu.memory_space<vmem>>, vector<4x4x64xf32>
    tpu.vector_store %arg7[%c0_29, %c0_30, %c0_31], %33 {strides = array<i32>} : memref<4x4x64xf32, #tpu.memory_space<vmem>>, vector<4x4x64xf32>,
    %35 = vector.extract_strided_slice %4 {offsets = [1, 0, 0], sizes = [4, 4, 1], strides = [1, 1, 1]} : vector<6x6x1xf32> to vector<4x4x1xf32>
    %c0_32 = arith.constant 0 : index
    %c3 = arith.constant 3 : index
    %c0_33 = arith.constant 0 : index
    %c0_34 = arith.constant 0 : index
    %36 = vector.load %arg4[%c0_32, %c3, %c0_33, %c0_34] : memref<1x9x1x64xf32, #tpu.memory_space<vmem>>, vector<1x1x1x64xf32>
    %37 = vector.shape_cast %36 : vector<1x1x1x64xf32> to vector<1x64xf32>
    %c0_35 = arith.constant 0 : index
    %c0_36 = arith.constant 0 : index
    %c0_37 = arith.constant 0 : index
    %38 = vector.load %arg7[%c0_35, %c0_36, %c0_37] : memref<4x4x64xf32, #tpu.memory_space<vmem>>, vector<4x4x64xf32>
    %39 = vector.shape_cast %37 : vector<1x64xf32> to vector<1x1x64xf32>
    %40 = vector.broadcast %35 : vector<4x4x1xf32> to vector<4x4x64xf32>
    %41 = vector.broadcast %39 : vector<1x1x64xf32> to vector<4x4x64xf32>
    %42 = arith.mulf %40, %41 : vector<4x4x64xf32>
    %43 = arith.addf %38, %42 : vector<4x4x64xf32>
    %c0_38 = arith.constant 0 : index
    %c0_39 = arith.constant 0 : index
    %c0_40 = arith.constant 0 : index
    %44 = vector.load %arg7[%c0_38, %c0_39, %c0_40] : memref<4x4x64xf32, #tpu.memory_space<vmem>>, vector<4x4x64xf32>
    tpu.vector_store %arg7[%c0_38, %c0_39, %c0_40], %43 {strides = array<i32>} : memref<4x4x64xf32, #tpu.memory_space<vmem>>, vector<4x4x64xf32>,
    %45 = vector.extract_strided_slice %4 {offsets = [1, 1, 0], sizes = [4, 4, 1], strides = [1, 1, 1]} : vector<6x6x1xf32> to vector<4x4x1xf32>
    %c0_41 = arith.constant 0 : index
    %c4 = arith.constant 4 : index
    %c0_42 = arith.constant 0 : index
    %c0_43 = arith.constant 0 : index
    %46 = vector.load %arg4[%c0_41, %c4, %c0_42, %c0_43] : memref<1x9x1x64xf32, #tpu.memory_space<vmem>>, vector<1x1x1x64xf32>
    %47 = vector.shape_cast %46 : vector<1x1x1x64xf32> to vector<1x64xf32>
    %c0_44 = arith.constant 0 : index
    %c0_45 = arith.constant 0 : index
    %c0_46 = arith.constant 0 : index
    %48 = vector.load %arg7[%c0_44, %c0_45, %c0_46] : memref<4x4x64xf32, #tpu.memory_space<vmem>>, vector<4x4x64xf32>
    %49 = vector.shape_cast %47 : vector<1x64xf32> to vector<1x1x64xf32>
    %50 = vector.broadcast %45 : vector<4x4x1xf32> to vector<4x4x64xf32>
    %51 = vector.broadcast %49 : vector<1x1x64xf32> to vector<4x4x64xf32>
    %52 = arith.mulf %50, %51 : vector<4x4x64xf32>
    %53 = arith.addf %48, %52 : vector<4x4x64xf32>
    %c0_47 = arith.constant 0 : index
    %c0_48 = arith.constant 0 : index
    %c0_49 = arith.constant 0 : index
    %54 = vector.load %arg7[%c0_47, %c0_48, %c0_49] : memref<4x4x64xf32, #tpu.memory_space<vmem>>, vector<4x4x64xf32>
    tpu.vector_store %arg7[%c0_47, %c0_48, %c0_49], %53 {strides = array<i32>} : memref<4x4x64xf32, #tpu.memory_space<vmem>>, vector<4x4x64xf32>,
    %55 = vector.extract_strided_slice %4 {offsets = [1, 2, 0], sizes = [4, 4, 1], strides = [1, 1, 1]} : vector<6x6x1xf32> to vector<4x4x1xf32>
    %c0_50 = arith.constant 0 : index
    %c5 = arith.constant 5 : index
    %c0_51 = arith.constant 0 : index
    %c0_52 = arith.constant 0 : index
    %56 = vector.load %arg4[%c0_50, %c5, %c0_51, %c0_52] : memref<1x9x1x64xf32, #tpu.memory_space<vmem>>, vector<1x1x1x64xf32>
    %57 = vector.shape_cast %56 : vector<1x1x1x64xf32> to vector<1x64xf32>
    %c0_53 = arith.constant 0 : index
    %c0_54 = arith.constant 0 : index
    %c0_55 = arith.constant 0 : index
    %58 = vector.load %arg7[%c0_53, %c0_54, %c0_55] : memref<4x4x64xf32, #tpu.memory_space<vmem>>, vector<4x4x64xf32>
    %59 = vector.shape_cast %57 : vector<1x64xf32> to vector<1x1x64xf32>
    %60 = vector.broadcast %55 : vector<4x4x1xf32> to vector<4x4x64xf32>
    %61 = vector.broadcast %59 : vector<1x1x64xf32> to vector<4x4x64xf32>
    %62 = arith.mulf %60, %61 : vector<4x4x64xf32>
    %63 = arith.addf %58, %62 : vector<4x4x64xf32>
    %c0_56 = arith.constant 0 : index
    %c0_57 = arith.constant 0 : index
    %c0_58 = arith.constant 0 : index
    %64 = vector.load %arg7[%c0_56, %c0_57, %c0_58] : memref<4x4x64xf32, #tpu.memory_space<vmem>>, vector<4x4x64xf32>
    tpu.vector_store %arg7[%c0_56, %c0_57, %c0_58], %63 {strides = array<i32>} : memref<4x4x64xf32, #tpu.memory_space<vmem>>, vector<4x4x64xf32>,
    %65 = vector.extract_strided_slice %4 {offsets = [2, 0, 0], sizes = [4, 4, 1], strides = [1, 1, 1]} : vector<6x6x1xf32> to vector<4x4x1xf32>
    %c0_59 = arith.constant 0 : index
    %c6 = arith.constant 6 : index
    %c0_60 = arith.constant 0 : index
    %c0_61 = arith.constant 0 : index
    %66 = vector.load %arg4[%c0_59, %c6, %c0_60, %c0_61] : memref<1x9x1x64xf32, #tpu.memory_space<vmem>>, vector<1x1x1x64xf32>
    %67 = vector.shape_cast %66 : vector<1x1x1x64xf32> to vector<1x64xf32>
    %c0_62 = arith.constant 0 : index
    %c0_63 = arith.constant 0 : index
    %c0_64 = arith.constant 0 : index
    %68 = vector.load %arg7[%c0_62, %c0_63, %c0_64] : memref<4x4x64xf32, #tpu.memory_space<vmem>>, vector<4x4x64xf32>
    %69 = vector.shape_cast %67 : vector<1x64xf32> to vector<1x1x64xf32>
    %70 = vector.broadcast %65 : vector<4x4x1xf32> to vector<4x4x64xf32>
    %71 = vector.broadcast %69 : vector<1x1x64xf32> to vector<4x4x64xf32>
    %72 = arith.mulf %70, %71 : vector<4x4x64xf32>
    %73 = arith.addf %68, %72 : vector<4x4x64xf32>
    %c0_65 = arith.constant 0 : index
    %c0_66 = arith.constant 0 : index
    %c0_67 = arith.constant 0 : index
    %74 = vector.load %arg7[%c0_65, %c0_66, %c0_67] : memref<4x4x64xf32, #tpu.memory_space<vmem>>, vector<4x4x64xf32>
    tpu.vector_store %arg7[%c0_65, %c0_66, %c0_67], %73 {strides = array<i32>} : memref<4x4x64xf32, #tpu.memory_space<vmem>>, vector<4x4x64xf32>,
    %75 = vector.extract_strided_slice %4 {offsets = [2, 1, 0], sizes = [4, 4, 1], strides = [1, 1, 1]} : vector<6x6x1xf32> to vector<4x4x1xf32>
    %c0_68 = arith.constant 0 : index
    %c7 = arith.constant 7 : index
    %c0_69 = arith.constant 0 : index
    %c0_70 = arith.constant 0 : index
    %76 = vector.load %arg4[%c0_68, %c7, %c0_69, %c0_70] : memref<1x9x1x64xf32, #tpu.memory_space<vmem>>, vector<1x1x1x64xf32>
    %77 = vector.shape_cast %76 : vector<1x1x1x64xf32> to vector<1x64xf32>
    %c0_71 = arith.constant 0 : index
    %c0_72 = arith.constant 0 : index
    %c0_73 = arith.constant 0 : index
    %78 = vector.load %arg7[%c0_71, %c0_72, %c0_73] : memref<4x4x64xf32, #tpu.memory_space<vmem>>, vector<4x4x64xf32>
    %79 = vector.shape_cast %77 : vector<1x64xf32> to vector<1x1x64xf32>
    %80 = vector.broadcast %75 : vector<4x4x1xf32> to vector<4x4x64xf32>
    %81 = vector.broadcast %79 : vector<1x1x64xf32> to vector<4x4x64xf32>
    %82 = arith.mulf %80, %81 : vector<4x4x64xf32>
    %83 = arith.addf %78, %82 : vector<4x4x64xf32>
    %c0_74 = arith.constant 0 : index
    %c0_75 = arith.constant 0 : index
    %c0_76 = arith.constant 0 : index
    %84 = vector.load %arg7[%c0_74, %c0_75, %c0_76] : memref<4x4x64xf32, #tpu.memory_space<vmem>>, vector<4x4x64xf32>
    tpu.vector_store %arg7[%c0_74, %c0_75, %c0_76], %83 {strides = array<i32>} : memref<4x4x64xf32, #tpu.memory_space<vmem>>, vector<4x4x64xf32>,
    %85 = vector.extract_strided_slice %4 {offsets = [2, 2, 0], sizes = [4, 4, 1], strides = [1, 1, 1]} : vector<6x6x1xf32> to vector<4x4x1xf32>
    %c0_77 = arith.constant 0 : index
    %c8 = arith.constant 8 : index
    %c0_78 = arith.constant 0 : index
    %c0_79 = arith.constant 0 : index
    %86 = vector.load %arg4[%c0_77, %c8, %c0_78, %c0_79] : memref<1x9x1x64xf32, #tpu.memory_space<vmem>>, vector<1x1x1x64xf32>
    %87 = vector.shape_cast %86 : vector<1x1x1x64xf32> to vector<1x64xf32>
    %c0_80 = arith.constant 0 : index
    %c0_81 = arith.constant 0 : index
    %c0_82 = arith.constant 0 : index
    %88 = vector.load %arg7[%c0_80, %c0_81, %c0_82] : memref<4x4x64xf32, #tpu.memory_space<vmem>>, vector<4x4x64xf32>
    %89 = vector.shape_cast %87 : vector<1x64xf32> to vector<1x1x64xf32>
    %90 = vector.broadcast %85 : vector<4x4x1xf32> to vector<4x4x64xf32>
    %91 = vector.broadcast %89 : vector<1x1x64xf32> to vector<4x4x64xf32>
    %92 = arith.mulf %90, %91 : vector<4x4x64xf32>
    %93 = arith.addf %88, %92 : vector<4x4x64xf32>
    %c0_83 = arith.constant 0 : index
    %c0_84 = arith.constant 0 : index
    %c0_85 = arith.constant 0 : index
    %94 = vector.load %arg7[%c0_83, %c0_84, %c0_85] : memref<4x4x64xf32, #tpu.memory_space<vmem>>, vector<4x4x64xf32>
    tpu.vector_store %arg7[%c0_83, %c0_84, %c0_85], %93 {strides = array<i32>} : memref<4x4x64xf32, #tpu.memory_space<vmem>>, vector<4x4x64xf32>,
    %c2_i32 = arith.constant 2 : i32
    %95 = arith.cmpi eq, %arg2, %c2_i32 : i32
    %96 = arith.extui %95 : i1 to i32
    %c0_i32_86 = arith.constant 0 : i32
    %97 = arith.cmpi ne, %96, %c0_i32_86 : i32
    scf.if %97 {
      %c0_87 = arith.constant 0 : index
      %c0_88 = arith.constant 0 : index
      %c0_89 = arith.constant 0 : index
      %98 = vector.load %arg7[%c0_87, %c0_88, %c0_89] : memref<4x4x64xf32, #tpu.memory_space<vmem>>, vector<4x4x64xf32>
      %c0_90 = arith.constant 0 : index
      %c0_91 = arith.constant 0 : index
      %c0_92 = arith.constant 0 : index
      %99 = vector.load %arg5[%c0_90, %c0_91, %c0_92] : memref<1x1x64xf32, #tpu.memory_space<vmem>>, vector<1x1x64xf32>
      %100 = vector.broadcast %99 : vector<1x1x64xf32> to vector<4x4x64xf32>
      %101 = arith.addf %98, %100 : vector<4x4x64xf32>
      %cst = arith.constant 0.000000e+00 : f32
      %102 = vector.broadcast %cst : f32 to vector<4x4x64xf32>
      %103 = arith.maximumf %101, %102 : vector<4x4x64xf32>
      %c0_93 = arith.constant 0 : index
      %c0_94 = arith.constant 0 : index
      %c0_95 = arith.constant 0 : index
      %c0_96 = arith.constant 0 : index
      %104 = vector.load %arg6[%c0_93, %c0_94, %c0_95, %c0_96] : memref<1x4x4x64xf32, #tpu.memory_space<vmem>>, vector<1x4x4x64xf32>
      %105 = vector.shape_cast %104 : vector<1x4x4x64xf32> to vector<4x4x64xf32>
      %106 = vector.shape_cast %103 : vector<4x4x64xf32> to vector<1x4x4x64xf32>
      tpu.vector_store %arg6[%c0_93, %c0_94, %c0_95, %c0_96], %106 {strides = array<i32>} : memref<1x4x4x64xf32, #tpu.memory_space<vmem>>, vector<1x4x4x64xf32>,
    } else {
    }
    return
  }
  func.func @transform_0(%arg0: i32, %arg1: i32, %arg2: i32) -> (i32, i32, i32, i32) {
    %c6_i32 = arith.constant 6 : i32
    %0 = arith.muli %arg0, %c6_i32 : i32
    %1 = arith.addi %0, %arg1 : i32
    %2 = arith.addi %1, %arg2 : i32
    %c0_i32 = arith.constant 0 : i32
    %c0_i32_0 = arith.constant 0 : i32
    %c0_i32_1 = arith.constant 0 : i32
    %c0_i32_2 = arith.constant 0 : i32
    return %2, %c0_i32, %c0_i32_0, %c0_i32_1 : i32, i32, i32, i32
  }
  func.func @transform_1(%arg0: i32, %arg1: i32, %arg2: i32) -> (i32, i32, i32, i32) {
    %c0_i32 = arith.constant 0 : i32
    %c0_i32_0 = arith.constant 0 : i32
    %c0_i32_1 = arith.constant 0 : i32
    %c0_i32_2 = arith.constant 0 : i32
    return %arg2, %c0_i32, %c0_i32_0, %c0_i32_1 : i32, i32, i32, i32
  }
  func.func @transform_2(%arg0: i32, %arg1: i32, %arg2: i32) -> (i32, i32, i32) {
    %c0_i32 = arith.constant 0 : i32
    %c0_i32_0 = arith.constant 0 : i32
    %c0_i32_1 = arith.constant 0 : i32
    %c0_i32_2 = arith.constant 0 : i32
    return %c0_i32, %c0_i32_0, %c0_i32_1 : i32, i32, i32
  }
  func.func @transform_3(%arg0: i32, %arg1: i32, %arg2: i32) -> (i32, i32, i32, i32) {
    %c4_i32 = arith.constant 4 : i32
    %0 = arith.muli %arg0, %c4_i32 : i32
    %1 = arith.addi %0, %arg1 : i32
    %c0_i32 = arith.constant 0 : i32
    %c0_i32_0 = arith.constant 0 : i32
    %c0_i32_1 = arith.constant 0 : i32
    %c0_i32_2 = arith.constant 0 : i32
    return %1, %c0_i32, %c0_i32_0, %c0_i32_1 : i32, i32, i32, i32
  }
}

</mosaic_0001>

<bundles_post_ra>
// kernel: _conv3d_core.1
= control target key start
LH: loop header
LB: loop body
LE: loop exit
PB: predicated region body
PF: predicated region fallthrough
CT: control target
= control target key end

     0   :  { %8 = vsyncpa [#allocation4], 0  ;;  %s1238_s0 = inlined_call_operand.vmem [shape: f32[12,6,6,1], index: 0, kind: input, shape index: {}]   ;;  %s1239_s1 = inlined_call_operand.vmem [shape: f32[3,9,1,64], index: 1, kind: input, shape index: {}]   ;;  %s1240_s2 = inlined_call_operand.vmem [shape: f32[1,1,64], index: 2, kind: input, shape index: {}]   ;;  %s1241_s3 = inlined_call_operand.hbm [shape: f32[8,4,4,64], index: 3, kind: output, shape index: {}]  }
   0x1   :  { %10 = vsyncpa [#allocation4 + $0x1], 0  ;;  %s969_s12 = smov 0   ;;  %s971_s13 = smov 0  }
   0x2   :  { %s973_s14 = smov 0   ;;  %s975_s15 = smov 0  }
   0x3   :  { %s977_s16 = smov 0   ;;  %s979_s17 = smov 0  }
   0x4   :  { %s981_s18 = smov 0   ;;  %s983_s19 = smov 0  }
   0x5   :  { %s985_s20 = smov 0   ;;  %s987_s21 = smov 0  }
   0x6 LB: > { %1245 = sst [smem:[#allocation6_spill]] %s938_s20  ;;  %s701_s22 = sadd.s32 4294967295, %s942_s21   ;;  %s942_s21 = sphi %s987_s21, %s16_s21   ;;  %s938_s20 = sphi %s985_s20, %s1254_s20   ;;  %s934_s19 = sphi %s983_s19, %s1261_s19   ;;  %s930_s18 = sphi %s981_s18, %s1260_s18   ;;  %s926_s17 = sphi %s979_s17, %s1251_s17   ;;  %s922_s16 = sphi %s977_s16, %s1259_s16   ;;  %s918_s15 = sphi %s975_s15, %s1258_s15   ;;  %s914_s14 = sphi %s973_s14, %s1257_s14   ;;  %s910_s13 = sphi %s971_s13, %s1256_s13   ;;  %s906_s12 = sphi %s969_s12, %s1255_s12  }
   0x7   : > { %s28_s23 = sadd.s32 1, %s930_s18  ;;  %s31_s24 = sadd.s32 1, %s934_s19 }
   0x8   : > { %p29_p0 = scmp.ge.s32.totalorder %s28_s23, 3  ;;  %s702_s25 = sadd.s32 4294967294, %s942_s21  }
   0x9   : > { %s35_s26 = sadd.s32 1, %s938_s20  ;;  %s703_s27 = sshll.u32 %s938_s20, 2 }
   0xa   : > { %s1263_s23 = smov (%p29_p0, %s28_s23), 0  ;;  %s1265_s24 = smov (!%p29_p0, %s31_s24), %s934_s19 }
   0xb   : > { %1246 = sst [smem:[#allocation7_spill]] %s1263_s23  ;;  %p135_p1 = scmp.ne.s32.totalorder %s914_s14, %s910_s13 }
   0xc   : > { %p33_p2 = scmp.ge.s32.totalorder %s1265_s24, 4  ;;  %p136_p3 = scmp.eq.s32.totalorder %s701_s22, 23 }
   0xd   : > { %p141_p4 = scmp.ne.s32.totalorder %s910_s13, %s906_s12  ;;  %p142_p5 = scmp.eq.s32.totalorder %s702_s25, 23 }
   0xe   : > { %s1267_s24 = smov (%p33_p2, %s1265_s24), 0  ;;  %s1269_s26 = smov (!%p33_p2, %s35_s26), %s938_s20 }
   0xf   : > { %1247 = sst [smem:[#allocation8_spill]] %s1267_s24  ;;  %p1035_p6 = por %p136_p3, %p135_p1 }
  0x10   : > { %p1039_p7 = por %p142_p5, %p141_p4  ;;  %p37_p8 = scmp.ge.s32.totalorder %s1269_s26, 2 }
  0x11   : > { %p707_p9 = scmp.ge.s32.totalorder %s942_s21, 1  ;;  %p184_p10 = scmp.lt.s32.totalorder %s942_s21, 25 }
  0x12   : > { %s1271_s26 = smov (%p37_p8, %s1269_s26), 0  ;;  %s119_s30 = sadd.s32 %s934_s19, %s703_s27 }
  0x13   : > { %1250 = sst [smem:[#allocation9_spill]] %s1271_s26  ;;  %p185_p11 = pnand %p707_p9, %p184_p10 }
  0x14   : > { %s704_s4 = sshll.u32 %s1271_s26, 2  ;;  %s125_s7 = sadd.s32 1, %s914_s14 }
  0x15   : > { %s121_s5 = sadd.s32 %s704_s4, %s1267_s24  ;;  %188 = sbr.rel (%p185_p11) target bundleno = 295 (0x127), region = 32 }
  0x16   : > { %s122_s6 = ssub.s32 %s119_s30, %s121_s5  ;;  %s212_s9 = sand.u32 (!%p185_p11), 1, %s910_s13  }
  0x17   : > { %p123_p12 = scmp.eq.s32.totalorder %s122_s6, 0  ;;  %s215_s10 = smul.u32 (!%p185_p11), 6, %s926_s17 }
  0x18   : > { %s708_s11 = sshll.u32 (!%p185_p11), %s212_s9, 4  ;;  %p226_p13 = scmp.lt.s32.totalorder (!%p185_p11), %s918_s15, 2 }
  0x19   : > { %s1052_s8 = scalar_select %p123_p12, %s914_s14, %s125_s7  }
  0x1a   : > { %s216_s22 = sadd.s32 (!%p185_p11), %s922_s16, %s215_s10  ;;  %s1070_s20 = scalar_lea.vmem (!%p185_p11), [#allocation3], %s708_s11 }
  0x1b   : > { %s217_s25 = sadd.s32 (!%p185_p11), %s918_s15, %s216_s22  ;;  %p710_p1 = scmp.ne.s32.totalorder (!%p185_p11), %s918_s15, 0 }
  0x1c   : > { %p218_p0 = scmp.lt.s32.totalorder %s217_s25, 11  ;;  %vm236_vm0 = vcmask (!%p710_p1), 519168   ;;  %v944_v0 = vmov (!%p710_p1), 0.0  }
  0x1d   : > { %s227_s27 = scalar_select %p226_p13, %s918_s15, 2 }
  0x1e   : > { %s1273_s25 = smov (!%p218_p0, %s217_s25), 11  ;;  %235 = sbr.rel (%p710_p1) target bundleno = 37 (0x25), region = 36 }
  0x1f   : > { %s738_s30 = smul.u32 9, %s227_s27  ;;  %237 = vst.msk [vmem:[#allocation2] sm:$0xf] (!%p710_p1), %vm236_vm0, %v944_v0  ;;  %238 = vst.msk [vmem:[#allocation2 + $0x4] sm:$0xf] (!%p710_p1), %vm236_vm0, %v944_v0 }
  0x20   : > { %s737_s4 = smul.u32 48, %s1273_s25  ;;  %239 = vst.msk [vmem:[#allocation2 + $0x8] sm:$0xf] (!%p710_p1), %vm236_vm0, %v944_v0  ;;  %240 = vst.msk [vmem:[#allocation2 + $0xc] sm:$0xf] (!%p710_p1), %vm236_vm0, %v944_v0 }
  0x21   : > { %s1065_s7 = scalar_lea.vmem %s1239_s1, %s738_s30 }
  0x22   : > { %s222_s23 = scalar_lea.vmem %s1238_s0, %s737_s4 }
  0x25 PF: > { %v243_v1 = vld [vmem:[%s222_s23 + $0x10] sm:$0x3f]  ;;  %v241_v2 = vld [vmem:[%s222_s23] sm:$0x3f]  ;;  %v945_v3 = vmov 0   ;;  %vm286_vm1 = vcmask 519168  }
  0x26   : > { %831 = vset.pattern.permute.xlu1 %v945_v3  ;;  %830 = vset.pattern.permute.xlu0 %v945_v3  ;;  %v244_v4 = vld [vmem:[%s222_s23 + $0x18] sm:$0x3f]  ;;  %v242_v5 = vld [vmem:[%s222_s23 + $0x8] sm:$0x3f]  ;;  %v245_v7 = vld [vmem:[%s222_s23 + $0x20] sm:$0x3f] }
  0x27   : > { %264 = vperm.xlu1 %831, %v243_v1   ;;  %254 = vperm.xlu0 %830, %v241_v2   ;;  %v246_v6 = vld [vmem:[%s222_s23 + $0x28] sm:$0x3f]  ;;  %v711_v8 = vld [vmem:[%s1065_s7] ss:$0 sm:$0xff]  ;;  %v713_v17 = vld [vmem:[%s1065_s7 + $0x1] ss:$0 sm:$0xff] }
  0x28   : > { %v248_v10 = vld [vmem:[#allocation2] sm:$0xf]  ;;  %v250_v11 = vld [vmem:[#allocation2 + $0x8] sm:$0xf]  ;;  %v251_v18 = vld [vmem:[#allocation2 + $0xc] sm:$0xf] }
  0x29   : > { %v249_v22 = vld [vmem:[#allocation2 + $0x4] sm:$0xf]  ;;  %v715_v36 = vld [vmem:[%s1065_s7 + $0x2] ss:$0 sm:$0xff]  ;;  %v717_v59 = vld [vmem:[%s1065_s7 + $0x3] ss:$0 sm:$0xff] }
  0x2a   : > { %p728_p2 = scmp.ne.s32.totalorder %s918_s15, 2 }
  0x2b   : > { %269 = vperm.xlu1 %831, %v244_v4   ;;  %259 = vperm.xlu0 %830, %v242_v5   ;;  %v719_v5 = vld [vmem:[%s1065_s7 + $0x4] ss:$0 sm:$0xff] }
  0x2f   : > { %472 = vperm.xlu1 %831, %v246_v6   ;;  %371 = vperm.xlu0 %830, %v245_v7  }
  0xa6   : > { %v1074_v9 = vpop.permute.xlu1 %264  ;;  %v255_v12 = vpop.permute.xlu0 %254 }
  0xa7   : > { %v280_v13 = vmul.f32 %v711_v8, %v1074_v9  ;;  %v278_v14 = vmul.f32 %v711_v8, %v255_v12  ;;  %v305_v24 = vmul.f32 %v713_v17, %v1074_v9  ;;  %v303_v25 = vmul.f32 %v713_v17, %v255_v12 }
  0xa8   : > { %v341_v40 = vmul.f32 %v715_v36, %v1074_v9  ;;  %v339_v41 = vmul.f32 %v715_v36, %v255_v12  ;;  %v381_v4 = vmul.f32 %v717_v59, %v1074_v9 }
  0xa9   : > { %v284_v15 = vadd.f32 %v280_v13, %v250_v11  ;;  %v282_v16 = vadd.f32 %v278_v14, %v248_v10  ;;  %v313_v28 = vrot.slane %v305_v24, 1  ;;  %v311_v29 = vrot.slane %v303_v25, 1  ;;  %v721_v25 = vld [vmem:[%s1065_s7 + $0x5] ss:$0 sm:$0xff] }
  0xaa   : > { %v1078_v19 = vpop.permute.xlu1 %269  ;;  %v1080_v20 = vpop.permute.xlu0 %259  ;;  %v349_v45 = vrot.slane %v341_v40, 2  ;;  %v347_v46 = vrot.slane %v339_v41, 2 }
  0xab   : > { %289 = vst.msk [vmem:[#allocation2 + $0x8] sm:$0xf] %vm286_vm1, %v284_v15  ;;  %287 = vst.msk [vmem:[#allocation2] sm:$0xf] %vm286_vm1, %v282_v16  ;;  %v281_v21 = vmul.f32 %v711_v8, %v1078_v19  ;;  %v279_v23 = vmul.f32 %v711_v8, %v1080_v20  ;;  %v306_v30 = vmul.f32 %v713_v17, %v1078_v19 }
  0xac   : > { %v304_v33 = vmul.f32 %v713_v17, %v1080_v20  ;;  %v342_v47 = vmul.f32 %v715_v36, %v1078_v19  ;;  %v340_v50 = vmul.f32 %v715_v36, %v1080_v20  ;;  %v382_v60 = vmul.f32 %v717_v59, %v1078_v19 }
  0xad   : > { %v285_v26 = vadd.f32 %v281_v21, %v251_v18  ;;  %v283_v27 = vadd.f32 %v279_v23, %v249_v22  ;;  %v314_v37 = vrot.slane %v306_v30, 1  ;;  %v380_v61 = vmul.f32 %v717_v59, %v1080_v20 }
  0xae   : > { %v312_v39 = vrot.slane %v304_v33, 1  ;;  %v350_v53 = vrot.slane %v342_v47, 2  ;;  %v348_v55 = vrot.slane %v340_v50, 2  ;;  %v1106_v0 = vpop.permute.xlu0 %371  ;;  %v406_v7 = vmul.f32 %v719_v5, %v1078_v19 }
  0xaf   : > { %290 = vst.msk [vmem:[#allocation2 + $0xc] sm:$0xf] %vm286_vm1, %v285_v26  ;;  %288 = vst.msk [vmem:[#allocation2 + $0x4] sm:$0xf] %vm286_vm1, %v283_v27  ;;  %v383_v3 = vmul.f32 %v717_v59, %v1106_v0  ;;  %v404_v10 = vmul.f32 %v719_v5, %v1080_v20  ;;  %v407_v15 = vmul.f32 %v719_v5, %v1106_v0 }
  0xb0   : > { %v414_v13 = vrot.slane %v406_v7, 1  ;;  %v405_v17 = vmul.f32 %v719_v5, %v1074_v9  ;;  %v442_v27 = vmul.f32 %v721_v25, %v1078_v19  ;;  %v441_v36 = vmul.f32 %v721_v25, %v1074_v9  ;;  %v727_v7 = vld [vmem:[%s1065_s7 + $0x8] ss:$0 sm:$0xff] }
  0xb1   : > { %v412_v14 = vrot.slane %v404_v10, 1  ;;  %v415_v23 = vrot.slane %v407_v15, 1  ;;  %v543_v15 = vmul.f32 %v727_v7, %v1106_v0 }
  0xb2   : > { %v295_v31 = vld [vmem:[#allocation2 + $0x8] sm:$0xf]  ;;  %v293_v32 = vld [vmem:[#allocation2] sm:$0xf]  ;;  %v413_v24 = vrot.slane %v405_v17, 1  ;;  %v449_v40 = vrot.slane %v441_v36, 2 }
  0xb3   : > { %v321_v34 = vadd.f32 %v313_v28, %v295_v31  ;;  %v319_v35 = vadd.f32 %v311_v29, %v293_v32  ;;  %v440_v29 = vmul.f32 %v721_v25, %v1080_v20  ;;  %v450_v32 = vrot.slane %v442_v27, 2 }
  0xb5   : > { %325 = vst.msk [vmem:[#allocation2 + $0x8] sm:$0xf] %vm286_vm1, %v321_v34  ;;  %323 = vst.msk [vmem:[#allocation2] sm:$0xf] %vm286_vm1, %v319_v35  ;;  %v448_v33 = vrot.slane %v440_v29, 2  ;;  %v443_v34 = vmul.f32 %v721_v25, %v1106_v0 }
  0xb6   : > { %v296_v38 = vld [vmem:[#allocation2 + $0xc] sm:$0xf]  ;;  %v294_v43 = vld [vmem:[#allocation2 + $0x4] sm:$0xf] }
  0xb7   : > { %v322_v42 = vadd.f32 %v314_v37, %v296_v38  ;;  %v320_v44 = vadd.f32 %v312_v39, %v294_v43  ;;  %v451_v20 = vrot.slane %v443_v34, 2 }
  0xb9   : > { %326 = vst.msk [vmem:[#allocation2 + $0xc] sm:$0xf] %vm286_vm1, %v322_v42  ;;  %324 = vst.msk [vmem:[#allocation2 + $0x4] sm:$0xf] %vm286_vm1, %v320_v44 }
  0xbc   : > { %v331_v48 = vld [vmem:[#allocation2 + $0x8] sm:$0xf]  ;;  %v329_v49 = vld [vmem:[#allocation2] sm:$0xf] }
  0xbd   : > { %v357_v51 = vadd.f32 %v349_v45, %v331_v48  ;;  %v355_v52 = vadd.f32 %v347_v46, %v329_v49  ;;  %v723_v45 = vld [vmem:[%s1065_s7 + $0x6] ss:$0 sm:$0xff]  ;;  %v473_v48 = vpop.permute.xlu1 %472 }
  0xbe   : > { %v481_v46 = vmul.f32 %v723_v45, %v1074_v9  ;;  %v483_v47 = vmul.f32 %v723_v45, %v1106_v0 }
  0xbf   : > { %361 = vst.msk [vmem:[#allocation2 + $0x8] sm:$0xf] %vm286_vm1, %v357_v51  ;;  %359 = vst.msk [vmem:[#allocation2] sm:$0xf] %vm286_vm1, %v355_v52 }
  0xc0   : > { %v332_v54 = vld [vmem:[#allocation2 + $0xc] sm:$0xf]  ;;  %v330_v57 = vld [vmem:[#allocation2 + $0x4] sm:$0xf] }
  0xc1   : > { %v358_v56 = vadd.f32 %v350_v53, %v332_v54  ;;  %v356_v58 = vadd.f32 %v348_v55, %v330_v57  ;;  %v725_v53 = vld [vmem:[%s1065_s7 + $0x7] ss:$0 sm:$0xff]  ;;  %v484_v54 = vmul.f32 %v723_v45, %v473_v48  ;;  %v482_v55 = vmul.f32 %v723_v45, %v1078_v19 }
  0xc2   : > { %v505_v57 = vmul.f32 %v725_v53, %v1074_v9 }
  0xc3   : > { %362 = vst.msk [vmem:[#allocation2 + $0xc] sm:$0xf] %vm286_vm1, %v358_v56  ;;  %360 = vst.msk [vmem:[#allocation2 + $0x4] sm:$0xf] %vm286_vm1, %v356_v58 }
  0xc6   : > { %v365_v62 = vld [vmem:[#allocation2] sm:$0xf]  ;;  %v367_v63 = vld [vmem:[#allocation2 + $0x8] sm:$0xf] }
  0xc7   : > { %v386_v1 = vadd.f32 %v382_v60, %v367_v63  ;;  %v384_v2 = vadd.f32 %v380_v61, %v365_v62  ;;  %v507_v60 = vmul.f32 %v725_v53, %v1106_v0  ;;  %v513_v62 = vrot.slane %v505_v57, 1 }
  0xc8   : > { %v508_v63 = vmul.f32 %v725_v53, %v473_v48 }
  0xc9   : > { %390 = vst.msk [vmem:[#allocation2 + $0x8] sm:$0xf] %vm286_vm1, %v386_v1  ;;  %388 = vst.msk [vmem:[#allocation2] sm:$0xf] %vm286_vm1, %v384_v2  ;;  %v515_v1 = vrot.slane %v507_v60, 1  ;;  %v506_v2 = vmul.f32 %v725_v53, %v1078_v19 }
  0xca   : > { %v368_v6 = vld [vmem:[#allocation2 + $0xc] sm:$0xf]  ;;  %v366_v8 = vld [vmem:[#allocation2 + $0x4] sm:$0xf] }
  0xcb   : > { %v387_v11 = vadd.f32 %v383_v3, %v368_v6  ;;  %v385_v12 = vadd.f32 %v381_v4, %v366_v8  ;;  %v516_v8 = vrot.slane %v508_v63, 1  ;;  %v514_v10 = vrot.slane %v506_v2, 1 }
  0xcd   : > { %391 = vst.msk [vmem:[#allocation2 + $0xc] sm:$0xf] %vm286_vm1, %v387_v11  ;;  %389 = vst.msk [vmem:[#allocation2 + $0x4] sm:$0xf] %vm286_vm1, %v385_v12  ;;  %v541_v12 = vmul.f32 %v727_v7, %v1074_v9 }
  0xcf   : > { %v549_v17 = vrot.slane %v541_v12, 2 }
  0xd0   : > { %v396_v16 = vld [vmem:[#allocation2 + $0x8] sm:$0xf]  ;;  %v394_v18 = vld [vmem:[#allocation2] sm:$0xf] }
  0xd1   : > { %v422_v21 = vadd.f32 %v414_v13, %v396_v16  ;;  %v420_v22 = vadd.f32 %v412_v14, %v394_v18  ;;  %v544_v18 = vmul.f32 %v727_v7, %v473_v48 }
  0xd3   : > { %426 = vst.msk [vmem:[#allocation2 + $0x8] sm:$0xf] %vm286_vm1, %v422_v21  ;;  %424 = vst.msk [vmem:[#allocation2] sm:$0xf] %vm286_vm1, %v420_v22  ;;  %v551_v21 = vrot.slane %v543_v15, 2  ;;  %v542_v22 = vmul.f32 %v727_v7, %v1078_v19  ;;  %v552_v27 = vrot.slane %v544_v18, 2 }
  0xd4   : > { %v397_v26 = vld [vmem:[#allocation2 + $0xc] sm:$0xf]  ;;  %v395_v28 = vld [vmem:[#allocation2 + $0x4] sm:$0xf] }
  0xd5   : > { %v423_v30 = vadd.f32 %v415_v23, %v397_v26  ;;  %v421_v31 = vadd.f32 %v413_v24, %v395_v28  ;;  %v550_v9 = vrot.slane %v542_v22, 2 }
  0xd7   : > { %427 = vst.msk [vmem:[#allocation2 + $0xc] sm:$0xf] %vm286_vm1, %v423_v30  ;;  %425 = vst.msk [vmem:[#allocation2 + $0x4] sm:$0xf] %vm286_vm1, %v421_v31  ;;  %v729_v31 = vld [vmem:[%s1240_s2] ss:$0 sm:$0xff] (!%p728_p2) }
  0xda   : > { %v432_v35 = vld [vmem:[#allocation2 + $0x8] sm:$0xf]  ;;  %v430_v37 = vld [vmem:[#allocation2] sm:$0xf] }
  0xdb   : > { %v458_v38 = vadd.f32 %v450_v32, %v432_v35  ;;  %v456_v39 = vadd.f32 %v448_v33, %v430_v37 }
  0xdd   : > { %460 = vst.msk [vmem:[#allocation2] sm:$0xf] %vm286_vm1, %v456_v39  ;;  %462 = vst.msk [vmem:[#allocation2 + $0x8] sm:$0xf] %vm286_vm1, %v458_v38 }
  0xde   : > { %v433_v41 = vld [vmem:[#allocation2 + $0xc] sm:$0xf]  ;;  %v431_v42 = vld [vmem:[#allocation2 + $0x4] sm:$0xf] }
  0xdf   : > { %v459_v43 = vadd.f32 %v451_v20, %v433_v41  ;;  %v457_v44 = vadd.f32 %v449_v40, %v431_v42 }
  0xe1   : > { %463 = vst.msk [vmem:[#allocation2 + $0xc] sm:$0xf] %vm286_vm1, %v459_v43  ;;  %461 = vst.msk [vmem:[#allocation2 + $0x4] sm:$0xf] %vm286_vm1, %v457_v44 }
  0xe4   : > { %v466_v49 = vld [vmem:[#allocation2] sm:$0xf]  ;;  %v468_v50 = vld [vmem:[#allocation2 + $0x8] sm:$0xf] }
  0xe5   : > { %v485_v51 = vadd.f32 %v481_v46, %v466_v49  ;;  %v487_v52 = vadd.f32 %v483_v47, %v468_v50 }
  0xe7   : > { %489 = vst.msk [vmem:[#allocation2] sm:$0xf] %vm286_vm1, %v485_v51  ;;  %491 = vst.msk [vmem:[#allocation2 + $0x8] sm:$0xf] %vm286_vm1, %v487_v52 }
  0xe8   : > { %v469_v56 = vld [vmem:[#allocation2 + $0xc] sm:$0xf]  ;;  %v467_v58 = vld [vmem:[#allocation2 + $0x4] sm:$0xf] }
  0xe9   : > { %v488_v59 = vadd.f32 %v484_v54, %v469_v56  ;;  %v486_v61 = vadd.f32 %v482_v55, %v467_v58 }
  0xeb   : > { %492 = vst.msk [vmem:[#allocation2 + $0xc] sm:$0xf] %vm286_vm1, %v488_v59  ;;  %490 = vst.msk [vmem:[#allocation2 + $0x4] sm:$0xf] %vm286_vm1, %v486_v61 }
  0xee   : > { %v495_v3 = vld [vmem:[#allocation2] sm:$0xf]  ;;  %v497_v4 = vld [vmem:[#allocation2 + $0x8] sm:$0xf] }
  0xef   : > { %v521_v5 = vadd.f32 %v513_v62, %v495_v3  ;;  %v523_v6 = vadd.f32 %v515_v1, %v497_v4 }
  0xf1   : > { %525 = vst.msk [vmem:[#allocation2] sm:$0xf] %vm286_vm1, %v521_v5  ;;  %527 = vst.msk [vmem:[#allocation2 + $0x8] sm:$0xf] %vm286_vm1, %v523_v6 }
  0xf2   : > { %v498_v11 = vld [vmem:[#allocation2 + $0xc] sm:$0xf]  ;;  %v496_v13 = vld [vmem:[#allocation2 + $0x4] sm:$0xf] }
  0xf3   : > { %v524_v14 = vadd.f32 %v516_v8, %v498_v11  ;;  %v522_v16 = vadd.f32 %v514_v10, %v496_v13 }
  0xf5   : > { %528 = vst.msk [vmem:[#allocation2 + $0xc] sm:$0xf] %vm286_vm1, %v524_v14  ;;  %526 = vst.msk [vmem:[#allocation2 + $0x4] sm:$0xf] %vm286_vm1, %v522_v16 }
  0xf8   : > { %v531_v23 = vld [vmem:[#allocation2] sm:$0xf]  ;;  %v533_v24 = vld [vmem:[#allocation2 + $0x8] sm:$0xf] }
  0xf9   : > { %v557_v25 = vadd.f32 %v549_v17, %v531_v23  ;;  %v559_v26 = vadd.f32 %v551_v21, %v533_v24  ;;  %568 = sbr.rel (%p728_p2) target bundleno = 268 (0x10c), region = 40 }
  0xfb   : > { %561 = vst.msk [vmem:[#allocation2] sm:$0xf] %vm286_vm1, %v557_v25  ;;  %563 = vst.msk [vmem:[#allocation2 + $0x8] sm:$0xf] %vm286_vm1, %v559_v26 }
  0xfc   : > { %v534_v0 = vld [vmem:[#allocation2 + $0xc] sm:$0xf]  ;;  %v532_v28 = vld [vmem:[#allocation2 + $0x4] sm:$0xf] }
  0xfd   : > { %v560_v29 = vadd.f32 %v552_v27, %v534_v0  ;;  %v558_v30 = vadd.f32 %v550_v9, %v532_v28 }
  0xff   : > { %564 = vst.msk [vmem:[#allocation2 + $0xc] sm:$0xf] %vm286_vm1, %v560_v29  ;;  %562 = vst.msk [vmem:[#allocation2 + $0x4] sm:$0xf] %vm286_vm1, %v558_v30 }
 0x102   : > { %v569_v19 = vld [vmem:[#allocation2] sm:$0xf]  ;;  %v571_v35 = vld [vmem:[#allocation2 + $0x8] sm:$0xf] }
 0x103   : > { %v580_v33 = vadd.f32 %v729_v31, %v569_v19  ;;  %v582_v37 = vadd.f32 %v729_v31, %v571_v35 }
 0x105   : > { %v584_v39 = vmax.f32 %v580_v33, 0.0  ;;  %v586_v40 = vmax.f32 %v582_v37, 0.0 }
 0x106   : > { %v570_v32 = vld [vmem:[#allocation2 + $0x4] sm:$0xf]  ;;  %v572_v36 = vld [vmem:[#allocation2 + $0xc] sm:$0xf] }
 0x107   : > { %v581_v34 = vadd.f32 %v729_v31, %v570_v32  ;;  %v583_v38 = vadd.f32 %v729_v31, %v572_v36  ;;  %588 = vst.msk [vmem:[%s1070_s20] sm:$0xf] %vm286_vm1, %v584_v39  ;;  %590 = vst.msk [vmem:[%s1070_s20 + $0x8] sm:$0xf] %vm286_vm1, %v586_v40 }
 0x109   : > { %v585_v20 = vmax.f32 %v581_v34, 0.0  ;;  %v587_v41 = vmax.f32 %v583_v38, 0.0 }
 0x10b   : > { %589 = vst.msk [vmem:[%s1070_s20 + $0x4] sm:$0xf] %vm286_vm1, %v585_v20  ;;  %591 = vst.msk [vmem:[%s1070_s20 + $0xc] sm:$0xf] %vm286_vm1, %v587_v41 }
 0x10c PF: > { %s731_s15 = sshll.u32 %s926_s17, 2  ;;  %s608_s10 = sshll.u32 %s1070_s20, 4  ;;  %s1171_s10 = int_to_ptr.vmem [resolvable:$true] %s608_s10 }
 0x10d   : > { %s601_s26 = sadd.s32 %s922_s16, %s731_s15  ;;  %s1180_s30 = scalar_lea.sflag [#allocation4], %s212_s9 }
 0x10e   : > { %s736_s11 = sshll.u32 %s601_s26, 8  ;;  %s832_s4 = scalar_lea.vmem %s1171_s10, 256 }
 0x10f   : > { %s1176_s27 = scalar_lea.hbm %s1241_s3, %s736_s11  ;;  %p833_p3 = scmp.ne.s32.totalorder %s1171_s10, %s832_s4 }
 0x110   : > { %s946_s16 = smov [#allocation3]  }
 0x111   : > { %p834_p4 = pnand %p833_p3, %p1035_p6  ;;  %s836_s17 = sshll.u32 %s946_s16, 4  ;;  %s837_s17 = int_to_ptr.vmem [resolvable:$false] %s836_s17 }
 0x112   : > { %s838_s20 = scalar_lea.vmem %s837_s17, 512  ;;  %p839_p8 = scmp.lt.s32.totalorder %s1171_s10, %s837_s17 }
 0x113   : > { %p835_p5 = pneg %p834_p4  ;;  %p840_p9 = scmp.lt.s32.totalorder %s838_s20, %s832_s4 }
 0x115   : > { %p841_p10 = por %p840_p9, %p839_p8 }
 0x117   : > { %p842_p11 = pnand %p841_p10, %p835_p5 }
 0x119   : > { %845 = shalt.err (!%p842_p11)
}
 0x11a   : > { %s846_s9 = scalar_lea.hbm %s1176_s27, 256  ;;  %s850_s7 = scalar_lea.hbm %s1241_s3, 2048 }
 0x11b   : > { %p847_p12 = scmp.ne.s32.totalorder %s1176_s27, %s846_s9  ;;  %p851_p1 = scmp.lt.u32.totalorder %s1176_s27, %s1241_s3 }
 0x11c   : > { %p852_p2 = scmp.lt.u32.totalorder %s850_s7, %s846_s9  ;;  %p854_p4 = scmp.lt.u32.totalorder %s846_s9, %s1176_s27 }
 0x11d   : > { %p848_p13 = pnand %p847_p12, %p1035_p6 }
 0x11e   : > { %p853_p3 = por %p852_p2, %p851_p1 }
 0x11f   : > { %p849_p0 = pneg %p848_p13 }
 0x120   : > { %p855_p5 = por %p854_p4, %p853_p3 }
 0x122   : > { %p856_p8 = pnand %p855_p5, %p849_p0 }
 0x124   : > { %859 = shalt.err (!%p856_p8)
}
 0x125   : > { %s947_s15 = smov 64   ;;  %s948_s26 = smov 4  }
 0x126   : > { %739 = dma.vmem_to_hbm [thread:$0]  (%p1035_p6), %s1171_s10, 256, %s1176_s27, %s1180_s30, %s947_s15, %s947_s15, %s948_s26  }
 0x127 PF: > { %p745_p9 = scmp.ge.s32.totalorder %s942_s21, 2  ;;  %s623_s11 = sand.u32 1, %s906_s12  }
 0x128   : > { %s624_s22 = scalar_lea.sflag [#allocation4], %s623_s11 }
 0x129   : > { %p742_p10 = pnand %p745_p9, %p1039_p7 }
 0x12b   : > { %901 = dma.done.wait (!%p742_p10), %s624_s22, 256  }
 0x12c   : > { %903 = vsyncadd (!%p742_p10), %s624_s22, 4294967040  ;;  %s16_s21 = sadd.s32 1, %s942_s21   ;;  %s1251_s17 = sld [smem:[#allocation6_spill]] }
 0x12d   : > { %p13_p11 = scmp.ge.s32.totalorder %s16_s21, 26   ;;  %s1252_s28 = sld [smem:[#allocation7_spill]] }
 0x12e   : > { %s1253_s10 = sld [smem:[#allocation8_spill]]  ;;  %s1254_s20 = sld [smem:[#allocation9_spill]] }
 0x12f   : > { %s1255_s12 = smov %s910_s13  ;;  %s1256_s13 = smov %s914_s14 }
 0x130   : > { %s1257_s14 = smov %s1052_s8  ;;  %s1258_s15 = smov %s930_s18 }
 0x131   : > { %s1259_s16 = smov %s934_s19  ;;  %15 = sbr.rel (!%p13_p11) target bundleno = 6 (0x6), region = 86 }
 0x133   : > { %s1260_s18 = smov %s1252_s28 }
 0x134   : > { %s1261_s19 = smov %s1253_s10 }
 0x138   :  { %629 = vsyncpa [#allocation4], 1 }
 0x139   :  { %631 = vsyncpa [#allocation4 + $0x1], 1 }

</bundles_post_ra>
